<compile_context>
chip_gen: v6e
topology: v6e:2x2x1
jax: 0.10.0
libtpu: 0.0.40
codegen_flags: <defaults>
</compile_context>

<pallas_src>
import functools

import jax
import jax.numpy as jnp
from jax.experimental import pallas as pl
from jax.experimental.pallas import tpu as pltpu


# ---------------------------------------------------------------------------
# Fused kernel: all GIN layers + pooling + 2-layer head in one body.
# ---------------------------------------------------------------------------
def _gin_fused_kernel(a_ref, x_ref, p_ref,
                      w1_ref, b1_ref, w2_ref, b2_ref,
                      wl1_ref, bl1_ref, wl2_ref, bl2_ref,
                      out_ref):
    f32 = jnp.float32
    a = a_ref[...]                       # (N_pad, N_pad)   A_hat
    p = p_ref[...]                       # (G_pad, N_pad)   mean-pool matrix
    h = x_ref[...]                       # (N_pad, 128)     node features (padded)
    num_layers = w1_ref.shape[0]

    # Accumulates  cat(h_1..h_L) @ W_head1  ==  sum_i (P @ h_i) @ W_head1[i]
    acc = jnp.zeros(out_ref.shape, f32)  # (G_pad, 128)

    for i in range(num_layers):
        # GINConv: MLP((1+eps)*x + sum of neighbors)  (eps baked into A_hat)
        agg = jnp.dot(a, h, preferred_element_type=f32)
        z = jnp.dot(agg, w1_ref[i], preferred_element_type=f32) + b1_ref[i]
        z = jnp.maximum(z, 0.0)                                   # MLP inner ReLU
        h = jnp.dot(z, w2_ref[i], preferred_element_type=f32) + b2_ref[i]
        h = jnp.maximum(h, 0.0)          # dropout (eval: identity) then relu
        ge = jnp.dot(p, h, preferred_element_type=f32)            # per-graph mean
        acc = acc + jnp.dot(ge, wl1_ref[i], preferred_element_type=f32)

    y1 = jnp.maximum(acc + bl1_ref[...], 0.0)                     # head ReLU
    out_ref[...] = (jnp.dot(y1, wl2_ref[...], preferred_element_type=f32)
                    + bl2_ref[...]).astype(out_ref.dtype)


def _round_up(v, m):
    return (v + m - 1) // m * m


# ---------------------------------------------------------------------------
# Jitted forward wrapper (dense-operator construction + one pallas_call).
# ---------------------------------------------------------------------------
@functools.partial(jax.jit, static_argnames=("num_graphs",))
def gin_forward_pallas(padded, x, edge_index, batch, *, num_graphs):
    n, fin = x.shape
    fp = padded["wl2"].shape[0]                     # lane-padded width (128)
    n_pad = _round_up(max(n, 8), 8)
    g_pad = _round_up(max(num_graphs, 8), 8)

    src, dst = edge_index[0], edge_index[1]

    # A_hat = (1 + eps) * I + A ,  A[i, j] = #edges j -> i   (GINConv, eps = 0)
    a_hat = jnp.zeros((n_pad, n_pad), jnp.float32)
    a_hat = a_hat.at[dst, src].add(1.0)
    diag = jnp.arange(n)
    a_hat = a_hat.at[diag, diag].add(1.0)

    # Mean-pool matrix: P[g, i] = 1/|graph g| for node i in graph g.
    counts = jnp.zeros((num_graphs,), jnp.float32).at[batch].add(1.0)
    pool = jnp.zeros((g_pad, n_pad), jnp.float32)
    pool = pool.at[batch, jnp.arange(n)].set(1.0 / counts[batch])

    # Lane-dense node features.
    x_pad = jnp.zeros((n_pad, fp), jnp.float32).at[:n, :fin].set(x)

    out = pl.pallas_call(
        _gin_fused_kernel,
        out_shape=jax.ShapeDtypeStruct((g_pad, fp), jnp.float32),
        in_specs=[pl.BlockSpec(memory_space=pltpu.VMEM)] * 11,
        out_specs=pl.BlockSpec(memory_space=pltpu.VMEM),
    )(a_hat, x_pad, pool,
      padded["w1"], padded["b1"], padded["w2"], padded["b2"],
      padded["wl1"], padded["bl1"], padded["wl2"], padded["bl2"])

    return out[:num_graphs, :1]


# ---------------------------------------------------------------------------
# Model: parameter construction (PyTorch-style init) + padded/stacked params.
# ---------------------------------------------------------------------------
class GINModelPallas:
    FP = 128  # lane-dense padded feature width

    def __init__(self, in_channels, hid_channels=32, num_layers=3, dp=0.15,
                 key=None):
        if key is None:
            key = jax.random.PRNGKey(42)
        self.num_layers = num_layers
        self.hid = hid_channels
        # TODO(synk): add a K-tiled grid + f32 accumulator if feature dims ever exceed 128.
        assert in_channels <= self.FP and hid_channels <= self.FP

        def linear_init(k, fan_in, fan_out):
            kw, kb = jax.random.split(k)
            bound = float(fan_in) ** -0.5
            w = jax.random.uniform(kw, (fan_in, fan_out), jnp.float32,
                                   minval=-bound, maxval=bound)
            b = jax.random.uniform(kb, (fan_out,), jnp.float32,
                                   minval=-bound, maxval=bound)
            return w, b

        # GINConv MLPs:  Linear(in, hid) -> ReLU -> Linear(hid, hid)
        convs = []
        for i in range(num_layers):
            input_dim = in_channels if i == 0 else hid_channels
            key, k1, k2 = jax.random.split(key, 3)
            w1, b1 = linear_init(k1, input_dim, hid_channels)
            w2, b2 = linear_init(k2, hid_channels, hid_channels)
            convs.append((w1, b1, w2, b2))
        key, kl1, kl2 = jax.random.split(key, 3)
        wl1, bl1 = linear_init(kl1, num_layers * hid_channels, hid_channels)
        wl2, bl2 = linear_init(kl2, hid_channels, 1)

        self.raw = {"convs": convs, "wl1": wl1, "bl1": bl1,
                    "wl2": wl2, "bl2": bl2}

        # --- hoisted, one-time padding / stacking (lane-dense kernel params) ---
        fp = self.FP

        def pad2(a):
            return jnp.zeros((fp, fp), jnp.float32).at[
                :a.shape[0], :a.shape[1]].set(a)

        def pad_bias(b):
            return jnp.zeros((1, fp), jnp.float32).at[0, :b.shape[0]].set(b)

        self.padded = {
            "w1": jnp.stack([pad2(w1) for (w1, _, _, _) in convs]),
            "b1": jnp.stack([pad_bias(b1) for (_, b1, _, _) in convs]),
            "w2": jnp.stack([pad2(w2) for (_, _, w2, _) in convs]),
            "b2": jnp.stack([pad_bias(b2) for (_, _, _, b2) in convs]),
            # cat(h_1..h_L) @ W_l1  ==  sum_i h_i @ W_l1[i*hid:(i+1)*hid]
            "wl1": jnp.stack([pad2(wl1[i * hid_channels:(i + 1) * hid_channels])
                              for i in range(num_layers)]),
            "bl1": pad_bias(bl1),
            "wl2": pad2(wl2),
            "bl2": pad_bias(bl2),
        }

    def __call__(self, data):
        graph_y = gin_forward_pallas(
            self.padded, data["x"], data["edge_index"], data["batch"],
            num_graphs=int(data["num_graphs"]))
        return graph_y, data["y"]


# ---------------------------------------------------------------------------
# Pure-JAX reference (scatter-based, unpadded) of the same forward.
# ---------------------------------------------------------------------------
def gin_forward_reference(raw, x, edge_index, batch, num_graphs):
    src, dst = edge_index[0], edge_index[1]
    h = x
    h_list = []
    for (w1, b1, w2, b2) in raw["convs"]:
        agg = jnp.zeros_like(h).at[dst].add(h[src])
        pre = h + agg                              # (1 + eps)*x_i + sum, eps=0
        z = jnp.maximum(pre @ w1 + b1, 0.0)
        hh = z @ w2 + b2
        hh = jnp.maximum(hh, 0.0)                  # dropout (eval) + relu
        h_list.append(hh)
        h = hh
    out = jnp.concatenate(h_list, axis=1)
    sums = jnp.zeros((num_graphs, out.shape[1]), jnp.float32).at[batch].add(out)
    counts = jnp.zeros((num_graphs,), jnp.float32).at[batch].add(1.0)
    ge = sums / counts[:, None]
    y1 = jnp.maximum(ge @ raw["wl1"] + raw["bl1"], 0.0)
    return y1 @ raw["wl2"] + raw["bl2"]


if __name__ == "__main__":
    in_channels = 16
    hid_channels = 32
    num_layers = 3
    num_nodes = 20
    num_edges = 64
    num_graphs = 3

    key = jax.random.PRNGKey(0)
    kx, ks, kd = jax.random.split(key, 3)
    x = jax.random.normal(kx, (num_nodes, in_channels), jnp.float32)
    src = jax.random.randint(ks, (num_edges,), 0, num_nodes)
    dst = jax.random.randint(kd, (num_edges,), 0, num_nodes)
    edge_index = jnp.stack([src, dst], axis=0).astype(jnp.int32)
    # node -> graph assignment (contiguous, every graph non-empty, like PyG)
    batch = jnp.concatenate([
        jnp.full((7,), 0, jnp.int32),
        jnp.full((6,), 1, jnp.int32),
        jnp.full((7,), 2, jnp.int32),
    ])
    y_labels = jnp.arange(num_graphs, dtype=jnp.float32)[:, None]

    model = GINModelPallas(in_channels, hid_channels=hid_channels,
                           num_layers=num_layers, key=jax.random.PRNGKey(1))

    data = {"x": x, "edge_index": edge_index, "batch": batch,
            "num_graphs": num_graphs, "y": y_labels}
    graph_y, _ = model(data)
    graph_y = jax.block_until_ready(graph_y)

    ref = gin_forward_reference(model.raw, x, edge_index, batch, num_graphs)
    assert graph_y.shape == (num_graphs, 1)
    assert jnp.allclose(graph_y, ref, atol=1e-4, rtol=1e-4)

    print("KERNEL_OK")
</pallas_src>

<mosaic_0001>
module attributes {stable_mosaic.version = 11 : i64} {
  func.func private @main(%arg0: i32) attributes {dimension_semantics = [#tpu.dimension_semantics<core_parallel>], iteration_bounds = array<i64: 2>, tpu.core_type = #tpu.core_type<sc_scalar_subcore>, window_params = []} {
    return
  }
}

module attributes {stable_mosaic.version = 11 : i64} {
  func.func private @main(%arg0: i32) attributes {dimension_semantics = [#tpu.dimension_semantics<core_parallel>], iteration_bounds = array<i64: 2>, tpu.core_type = #tpu.core_type<sc_scalar_subcore>, window_params = []} {
    return
  }
}

module attributes {stable_mosaic.version = 11 : i64} {
  func.func @_gin_fused_kernel(%arg0: memref<24x24xf32, #tpu.memory_space<vmem>>, %arg1: memref<24x128xf32, #tpu.memory_space<vmem>>, %arg2: memref<8x24xf32, #tpu.memory_space<vmem>>, %arg3: memref<3x128x128xf32, #tpu.memory_space<vmem>>, %arg4: memref<3x1x128xf32, #tpu.memory_space<vmem>>, %arg5: memref<3x128x128xf32, #tpu.memory_space<vmem>>, %arg6: memref<3x1x128xf32, #tpu.memory_space<vmem>>, %arg7: memref<3x128x128xf32, #tpu.memory_space<vmem>>, %arg8: memref<1x128xf32, #tpu.memory_space<vmem>>, %arg9: memref<128x128xf32, #tpu.memory_space<vmem>>, %arg10: memref<1x128xf32, #tpu.memory_space<vmem>>, %arg11: memref<8x128xf32, #tpu.memory_space<vmem>>) attributes {dimension_semantics = [], scalar_prefetch = 0 : i64, scratch_operands = 0 : i64, tpu.core_type = #tpu.core_type<tc>} {
    %c0 = arith.constant 0 : index
    %c0_0 = arith.constant 0 : index
    %0 = vector.load %arg0[%c0, %c0_0] : memref<24x24xf32, #tpu.memory_space<vmem>>, vector<24x24xf32>
    %c0_1 = arith.constant 0 : index
    %c0_2 = arith.constant 0 : index
    %1 = vector.load %arg2[%c0_1, %c0_2] : memref<8x24xf32, #tpu.memory_space<vmem>>, vector<8x24xf32>
    %c0_3 = arith.constant 0 : index
    %c0_4 = arith.constant 0 : index
    %2 = vector.load %arg1[%c0_3, %c0_4] : memref<24x128xf32, #tpu.memory_space<vmem>>, vector<24x128xf32>
    %cst = arith.constant 0.000000e+00 : f32
    %3 = vector.broadcast %cst : f32 to vector<8x128xf32>
    %cst_5 = arith.constant dense<0.000000e+00> : vector<24x128xf32>
    %4 = tpu.matmul %0, %2, %cst_5 {dimension_numbers = #tpu.dot_dimension_numbers<[1], [0], [0], [1], [0, 0, 1, 1], [], []>} : vector<24x24xf32>, vector<24x128xf32>, vector<24x128xf32> -> vector<24x128xf32>
    %c0_6 = arith.constant 0 : index
    %c0_7 = arith.constant 0 : index
    %c0_8 = arith.constant 0 : index
    %5 = vector.load %arg3[%c0_6, %c0_7, %c0_8] : memref<3x128x128xf32, #tpu.memory_space<vmem>>, vector<1x128x128xf32>
    %6 = vector.shape_cast %5 : vector<1x128x128xf32> to vector<128x128xf32>
    %cst_9 = arith.constant dense<0.000000e+00> : vector<24x128xf32>
    %7 = tpu.matmul %4, %6, %cst_9 {dimension_numbers = #tpu.dot_dimension_numbers<[1], [0], [0], [1], [0, 0, 1, 1], [], []>} : vector<24x128xf32>, vector<128x128xf32>, vector<24x128xf32> -> vector<24x128xf32>
    %c0_10 = arith.constant 0 : index
    %c0_11 = arith.constant 0 : index
    %c0_12 = arith.constant 0 : index
    %8 = vector.load %arg4[%c0_10, %c0_11, %c0_12] : memref<3x1x128xf32, #tpu.memory_space<vmem>>, vector<1x1x128xf32>
    %9 = vector.shape_cast %8 : vector<1x1x128xf32> to vector<1x128xf32>
    %10 = vector.broadcast %9 : vector<1x128xf32> to vector<24x128xf32>
    %11 = arith.addf %7, %10 : vector<24x128xf32>
    %cst_13 = arith.constant 0.000000e+00 : f32
    %12 = vector.broadcast %cst_13 : f32 to vector<24x128xf32>
    %13 = arith.maximumf %11, %12 : vector<24x128xf32>
    %c0_14 = arith.constant 0 : index
    %c0_15 = arith.constant 0 : index
    %c0_16 = arith.constant 0 : index
    %14 = vector.load %arg5[%c0_14, %c0_15, %c0_16] : memref<3x128x128xf32, #tpu.memory_space<vmem>>, vector<1x128x128xf32>
    %15 = vector.shape_cast %14 : vector<1x128x128xf32> to vector<128x128xf32>
    %cst_17 = arith.constant dense<0.000000e+00> : vector<24x128xf32>
    %16 = tpu.matmul %13, %15, %cst_17 {dimension_numbers = #tpu.dot_dimension_numbers<[1], [0], [0], [1], [0, 0, 1, 1], [], []>} : vector<24x128xf32>, vector<128x128xf32>, vector<24x128xf32> -> vector<24x128xf32>
    %c0_18 = arith.constant 0 : index
    %c0_19 = arith.constant 0 : index
    %c0_20 = arith.constant 0 : index
    %17 = vector.load %arg6[%c0_18, %c0_19, %c0_20] : memref<3x1x128xf32, #tpu.memory_space<vmem>>, vector<1x1x128xf32>
    %18 = vector.shape_cast %17 : vector<1x1x128xf32> to vector<1x128xf32>
    %19 = vector.broadcast %18 : vector<1x128xf32> to vector<24x128xf32>
    %20 = arith.addf %16, %19 : vector<24x128xf32>
    %cst_21 = arith.constant 0.000000e+00 : f32
    %21 = vector.broadcast %cst_21 : f32 to vector<24x128xf32>
    %22 = arith.maximumf %20, %21 : vector<24x128xf32>
    %cst_22 = arith.constant dense<0.000000e+00> : vector<8x128xf32>
    %23 = tpu.matmul %1, %22, %cst_22 {dimension_numbers = #tpu.dot_dimension_numbers<[1], [0], [0], [1], [0, 0, 1, 1], [], []>} : vector<8x24xf32>, vector<24x128xf32>, vector<8x128xf32> -> vector<8x128xf32>
    %c0_23 = arith.constant 0 : index
    %c0_24 = arith.constant 0 : index
    %c0_25 = arith.constant 0 : index
    %24 = vector.load %arg7[%c0_23, %c0_24, %c0_25] : memref<3x128x128xf32, #tpu.memory_space<vmem>>, vector<1x128x128xf32>
    %25 = vector.shape_cast %24 : vector<1x128x128xf32> to vector<128x128xf32>
    %cst_26 = arith.constant dense<0.000000e+00> : vector<8x128xf32>
    %26 = tpu.matmul %23, %25, %cst_26 {dimension_numbers = #tpu.dot_dimension_numbers<[1], [0], [0], [1], [0, 0, 1, 1], [], []>} : vector<8x128xf32>, vector<128x128xf32>, vector<8x128xf32> -> vector<8x128xf32>
    %27 = arith.addf %3, %26 : vector<8x128xf32>
    %cst_27 = arith.constant dense<0.000000e+00> : vector<24x128xf32>
    %28 = tpu.matmul %0, %22, %cst_27 {dimension_numbers = #tpu.dot_dimension_numbers<[1], [0], [0], [1], [0, 0, 1, 1], [], []>} : vector<24x24xf32>, vector<24x128xf32>, vector<24x128xf32> -> vector<24x128xf32>
    %c1 = arith.constant 1 : index
    %c0_28 = arith.constant 0 : index
    %c0_29 = arith.constant 0 : index
    %29 = vector.load %arg3[%c1, %c0_28, %c0_29] : memref<3x128x128xf32, #tpu.memory_space<vmem>>, vector<1x128x128xf32>
    %30 = vector.shape_cast %29 : vector<1x128x128xf32> to vector<128x128xf32>
    %cst_30 = arith.constant dense<0.000000e+00> : vector<24x128xf32>
    %31 = tpu.matmul %28, %30, %cst_30 {dimension_numbers = #tpu.dot_dimension_numbers<[1], [0], [0], [1], [0, 0, 1, 1], [], []>} : vector<24x128xf32>, vector<128x128xf32>, vector<24x128xf32> -> vector<24x128xf32>
    %c1_31 = arith.constant 1 : index
    %c0_32 = arith.constant 0 : index
    %c0_33 = arith.constant 0 : index
    %32 = vector.load %arg4[%c1_31, %c0_32, %c0_33] : memref<3x1x128xf32, #tpu.memory_space<vmem>>, vector<1x1x128xf32>
    %33 = vector.shape_cast %32 : vector<1x1x128xf32> to vector<1x128xf32>
    %34 = vector.broadcast %33 : vector<1x128xf32> to vector<24x128xf32>
    %35 = arith.addf %31, %34 : vector<24x128xf32>
    %cst_34 = arith.constant 0.000000e+00 : f32
    %36 = vector.broadcast %cst_34 : f32 to vector<24x128xf32>
    %37 = arith.maximumf %35, %36 : vector<24x128xf32>
    %c1_35 = arith.constant 1 : index
    %c0_36 = arith.constant 0 : index
    %c0_37 = arith.constant 0 : index
    %38 = vector.load %arg5[%c1_35, %c0_36, %c0_37] : memref<3x128x128xf32, #tpu.memory_space<vmem>>, vector<1x128x128xf32>
    %39 = vector.shape_cast %38 : vector<1x128x128xf32> to vector<128x128xf32>
    %cst_38 = arith.constant dense<0.000000e+00> : vector<24x128xf32>
    %40 = tpu.matmul %37, %39, %cst_38 {dimension_numbers = #tpu.dot_dimension_numbers<[1], [0], [0], [1], [0, 0, 1, 1], [], []>} : vector<24x128xf32>, vector<128x128xf32>, vector<24x128xf32> -> vector<24x128xf32>
    %c1_39 = arith.constant 1 : index
    %c0_40 = arith.constant 0 : index
    %c0_41 = arith.constant 0 : index
    %41 = vector.load %arg6[%c1_39, %c0_40, %c0_41] : memref<3x1x128xf32, #tpu.memory_space<vmem>>, vector<1x1x128xf32>
    %42 = vector.shape_cast %41 : vector<1x1x128xf32> to vector<1x128xf32>
    %43 = vector.broadcast %42 : vector<1x128xf32> to vector<24x128xf32>
    %44 = arith.addf %40, %43 : vector<24x128xf32>
    %cst_42 = arith.constant 0.000000e+00 : f32
    %45 = vector.broadcast %cst_42 : f32 to vector<24x128xf32>
    %46 = arith.maximumf %44, %45 : vector<24x128xf32>
    %cst_43 = arith.constant dense<0.000000e+00> : vector<8x128xf32>
    %47 = tpu.matmul %1, %46, %cst_43 {dimension_numbers = #tpu.dot_dimension_numbers<[1], [0], [0], [1], [0, 0, 1, 1], [], []>} : vector<8x24xf32>, vector<24x128xf32>, vector<8x128xf32> -> vector<8x128xf32>
    %c1_44 = arith.constant 1 : index
    %c0_45 = arith.constant 0 : index
    %c0_46 = arith.constant 0 : index
    %48 = vector.load %arg7[%c1_44, %c0_45, %c0_46] : memref<3x128x128xf32, #tpu.memory_space<vmem>>, vector<1x128x128xf32>
    %49 = vector.shape_cast %48 : vector<1x128x128xf32> to vector<128x128xf32>
    %cst_47 = arith.constant dense<0.000000e+00> : vector<8x128xf32>
    %50 = tpu.matmul %47, %49, %cst_47 {dimension_numbers = #tpu.dot_dimension_numbers<[1], [0], [0], [1], [0, 0, 1, 1], [], []>} : vector<8x128xf32>, vector<128x128xf32>, vector<8x128xf32> -> vector<8x128xf32>
    %51 = arith.addf %27, %50 : vector<8x128xf32>
    %cst_48 = arith.constant dense<0.000000e+00> : vector<24x128xf32>
    %52 = tpu.matmul %0, %46, %cst_48 {dimension_numbers = #tpu.dot_dimension_numbers<[1], [0], [0], [1], [0, 0, 1, 1], [], []>} : vector<24x24xf32>, vector<24x128xf32>, vector<24x128xf32> -> vector<24x128xf32>
    %c2 = arith.constant 2 : index
    %c0_49 = arith.constant 0 : index
    %c0_50 = arith.constant 0 : index
    %53 = vector.load %arg3[%c2, %c0_49, %c0_50] : memref<3x128x128xf32, #tpu.memory_space<vmem>>, vector<1x128x128xf32>
    %54 = vector.shape_cast %53 : vector<1x128x128xf32> to vector<128x128xf32>
    %cst_51 = arith.constant dense<0.000000e+00> : vector<24x128xf32>
    %55 = tpu.matmul %52, %54, %cst_51 {dimension_numbers = #tpu.dot_dimension_numbers<[1], [0], [0], [1], [0, 0, 1, 1], [], []>} : vector<24x128xf32>, vector<128x128xf32>, vector<24x128xf32> -> vector<24x128xf32>
    %c2_52 = arith.constant 2 : index
    %c0_53 = arith.constant 0 : index
    %c0_54 = arith.constant 0 : index
    %56 = vector.load %arg4[%c2_52, %c0_53, %c0_54] : memref<3x1x128xf32, #tpu.memory_space<vmem>>, vector<1x1x128xf32>
    %57 = vector.shape_cast %56 : vector<1x1x128xf32> to vector<1x128xf32>
    %58 = vector.broadcast %57 : vector<1x128xf32> to vector<24x128xf32>
    %59 = arith.addf %55, %58 : vector<24x128xf32>
    %cst_55 = arith.constant 0.000000e+00 : f32
    %60 = vector.broadcast %cst_55 : f32 to vector<24x128xf32>
    %61 = arith.maximumf %59, %60 : vector<24x128xf32>
    %c2_56 = arith.constant 2 : index
    %c0_57 = arith.constant 0 : index
    %c0_58 = arith.constant 0 : index
    %62 = vector.load %arg5[%c2_56, %c0_57, %c0_58] : memref<3x128x128xf32, #tpu.memory_space<vmem>>, vector<1x128x128xf32>
    %63 = vector.shape_cast %62 : vector<1x128x128xf32> to vector<128x128xf32>
    %cst_59 = arith.constant dense<0.000000e+00> : vector<24x128xf32>
    %64 = tpu.matmul %61, %63, %cst_59 {dimension_numbers = #tpu.dot_dimension_numbers<[1], [0], [0], [1], [0, 0, 1, 1], [], []>} : vector<24x128xf32>, vector<128x128xf32>, vector<24x128xf32> -> vector<24x128xf32>
    %c2_60 = arith.constant 2 : index
    %c0_61 = arith.constant 0 : index
    %c0_62 = arith.constant 0 : index
    %65 = vector.load %arg6[%c2_60, %c0_61, %c0_62] : memref<3x1x128xf32, #tpu.memory_space<vmem>>, vector<1x1x128xf32>
    %66 = vector.shape_cast %65 : vector<1x1x128xf32> to vector<1x128xf32>
    %67 = vector.broadcast %66 : vector<1x128xf32> to vector<24x128xf32>
    %68 = arith.addf %64, %67 : vector<24x128xf32>
    %cst_63 = arith.constant 0.000000e+00 : f32
    %69 = vector.broadcast %cst_63 : f32 to vector<24x128xf32>
    %70 = arith.maximumf %68, %69 : vector<24x128xf32>
    %cst_64 = arith.constant dense<0.000000e+00> : vector<8x128xf32>
    %71 = tpu.matmul %1, %70, %cst_64 {dimension_numbers = #tpu.dot_dimension_numbers<[1], [0], [0], [1], [0, 0, 1, 1], [], []>} : vector<8x24xf32>, vector<24x128xf32>, vector<8x128xf32> -> vector<8x128xf32>
    %c2_65 = arith.constant 2 : index
    %c0_66 = arith.constant 0 : index
    %c0_67 = arith.constant 0 : index
    %72 = vector.load %arg7[%c2_65, %c0_66, %c0_67] : memref<3x128x128xf32, #tpu.memory_space<vmem>>, vector<1x128x128xf32>
    %73 = vector.shape_cast %72 : vector<1x128x128xf32> to vector<128x128xf32>
    %cst_68 = arith.constant dense<0.000000e+00> : vector<8x128xf32>
    %74 = tpu.matmul %71, %73, %cst_68 {dimension_numbers = #tpu.dot_dimension_numbers<[1], [0], [0], [1], [0, 0, 1, 1], [], []>} : vector<8x128xf32>, vector<128x128xf32>, vector<8x128xf32> -> vector<8x128xf32>
    %75 = arith.addf %51, %74 : vector<8x128xf32>
    %c0_69 = arith.constant 0 : index
    %c0_70 = arith.constant 0 : index
    %76 = vector.load %arg8[%c0_69, %c0_70] : memref<1x128xf32, #tpu.memory_space<vmem>>, vector<1x128xf32>
    %77 = vector.broadcast %76 : vector<1x128xf32> to vector<8x128xf32>
    %78 = arith.addf %75, %77 : vector<8x128xf32>
    %cst_71 = arith.constant 0.000000e+00 : f32
    %79 = vector.broadcast %cst_71 : f32 to vector<8x128xf32>
    %80 = arith.maximumf %78, %79 : vector<8x128xf32>
    %c0_72 = arith.constant 0 : index
    %c0_73 = arith.constant 0 : index
    %81 = vector.load %arg9[%c0_72, %c0_73] : memref<128x128xf32, #tpu.memory_space<vmem>>, vector<128x128xf32>
    %cst_74 = arith.constant dense<0.000000e+00> : vector<8x128xf32>
    %82 = tpu.matmul %80, %81, %cst_74 {dimension_numbers = #tpu.dot_dimension_numbers<[1], [0], [0], [1], [0, 0, 1, 1], [], []>} : vector<8x128xf32>, vector<128x128xf32>, vector<8x128xf32> -> vector<8x128xf32>
    %c0_75 = arith.constant 0 : index
    %c0_76 = arith.constant 0 : index
    %83 = vector.load %arg10[%c0_75, %c0_76] : memref<1x128xf32, #tpu.memory_space<vmem>>, vector<1x128xf32>
    %84 = vector.broadcast %83 : vector<1x128xf32> to vector<8x128xf32>
    %85 = arith.addf %82, %84 : vector<8x128xf32>
    %c0_77 = arith.constant 0 : index
    %c0_78 = arith.constant 0 : index
    %86 = vector.load %arg11[%c0_77, %c0_78] : memref<8x128xf32, #tpu.memory_space<vmem>>, vector<8x128xf32>
    tpu.vector_store %arg11[%c0_77, %c0_78], %85 {strides = array<i32>} : memref<8x128xf32, #tpu.memory_space<vmem>>, vector<8x128xf32>,
    return
  }
}

</mosaic_0001>

<bundles_post_ra>
// kernel: gin_forward_pallas.1
= control target key start
LH: loop header
LB: loop body
LE: loop exit
PB: predicated region body
PF: predicated region fallthrough
CT: control target
= control target key end

     0   :  { %16 = vsyncpa [#allocation3], 0  ;;  %s2352_s17 = smov [#allocation2]   ;;  %s3243_s0 = inlined_call_operand.hbm [shape: f32[24,24], index: 0, kind: input, shape index: {}]   ;;  %s3244_s1 = inlined_call_operand.vmem [shape: f32[24,128], index: 1, kind: input, shape index: {}]   ;;  %s3245_s2 = inlined_call_operand.vmem [shape: f32[8,24], index: 2, kind: input, shape index: {}]   ;;  %s3246_s3 = inlined_call_operand.vmem [shape: f32[3,128,128], index: 3, kind: input, shape index: {}]   ;;  %s3247_s4 = inlined_call_operand.vmem [shape: f32[3,1,128], index: 4, kind: input, shape index: {}]   ;;  %s3248_s5 = inlined_call_operand.vmem [shape: f32[3,128,128], index: 5, kind: input, shape index: {}]   ;;  %s3249_s6 = inlined_call_operand.vmem [shape: f32[3,1,128], index: 6, kind: input, shape index: {}]   ;;  %s3250_s7 = inlined_call_operand.vmem [shape: f32[3,128,128], index: 7, kind: input, shape index: {}]   ;;  %s3251_s8 = inlined_call_operand.vmem [shape: f32[1,128], index: 8, kind: input, shape index: {}]   ;;  %s3252_s9 = inlined_call_operand.vmem [shape: f32[128,128], index: 9, kind: input, shape index: {}]   ;;  %s3253_s10 = inlined_call_operand.vmem [shape: f32[1,128], index: 10, kind: input, shape index: {}]   ;;  %s3254_s11 = inlined_call_operand.vmem [shape: f32[8,128], index: 11, kind: output, shape index: {}]  }
   0x1   :  { %s22_s18 = sshll.u32 %s2352_s17, 4  ;;  %s23_s18 = int_to_ptr.vmem [resolvable:$true] %s22_s18 }
   0x2   :  { %s2338_s19 = scalar_lea.vmem %s23_s18, 384  ;;  %p2343_p1 = scmp.lt.s32.totalorder %s23_s18, %s23_s18 }
   0x3   :  { %p2339_p0 = scmp.ne.s32.totalorder %s23_s18, %s2338_s19  ;;  %p2344_p2 = scmp.lt.s32.totalorder %s2338_s19, %s2338_s19 }
   0x5   :  { %p2345_p3 = por %p2344_p2, %p2343_p1 }
   0x7   :  { %p2346_p4 = pnand %p2345_p3, %p2339_p0 }
   0x9   :  { %2349 = shalt.err (!%p2346_p4)
}
   0xa   :  { %s2353_s20 = smov 128   ;;  %s2354_s21 = smov 8  }
   0xb   :  { %28 = dma.hbm_to_vmem [thread:$0]  %s3243_s0, 384, %s23_s18, [#allocation3], %s2353_s20, %s2353_s20, %s2354_s21  }
   0xc   :  { %2350 = dma.done.wait [#allocation3], 384  }
   0xd   :  { %2351 = vsyncadd [#allocation3], 4294966912  ;;  %v2355_v0 = vmov 0.0   ;;  %vm2356_vm0 = vmmov 0   ;;  %v58_v1 = vld [vmem:[%s3244_s1 + $0x10] sm:$0xff]  ;;  %v57_v2 = vld [vmem:[%s3244_s1 + $0x8] sm:$0xff] }
   0xe   :  { %1867 = vmatprep.subr.mxu1 %v2355_v0  ;;  %1873 = vmatprep.mubr.msk.f32.mxu1 %vm2356_vm0, %v2355_v0  ;;  %v56_v3 = vld [vmem:[%s3244_s1] sm:$0xff]  ;;  %vm59_vm1 = vcmask 195584   ;;  %v164_v5 = vld [vmem:[%s3246_s3 + $0x78] sm:$0xff]  ;;  %v163_v6 = vld [vmem:[%s3246_s3 + $0x70] sm:$0xff] }
   0xf   :  { %1923 = vmatprep.subr.mxu0 %v2355_v0  ;;  %1955 = vmatprep.mubr.msk.f32.mxu0 %vm2356_vm0, %v2355_v0  ;;  %v2436_v4 = vld [vmem:[#allocation2] sm:$0xff]  ;;  %v2450_v7 = vld [vmem:[#allocation2 + $0x8] sm:$0xff]  ;;  %v2464_v10 = vld [vmem:[#allocation2 + $0x10] sm:$0xff] }
  0x10   :  { %1868 = vmatpush3.msra.mxu1 %v58_v1  ;;  %v162_v8 = vld [vmem:[%s3246_s3 + $0x68] sm:$0xff]  ;;  %v161_v9 = vld [vmem:[%s3246_s3 + $0x60] sm:$0xff]  ;;  %v160_v11 = vld [vmem:[%s3246_s3 + $0x58] sm:$0xff] }
  0x11   :  { %1869 = vmatprep.subr.mxu1 %v2355_v0  ;;  %v159_v12 = vld [vmem:[%s3246_s3 + $0x50] sm:$0xff]  ;;  %v158_v13 = vld [vmem:[%s3246_s3 + $0x48] sm:$0xff]  ;;  %v157_v14 = vld [vmem:[%s3246_s3 + $0x40] sm:$0xff] }
  0x12   :  { %1870 = vmatpush3.msra.mxu1 %v57_v2  ;;  %v156_v15 = vld [vmem:[%s3246_s3 + $0x38] sm:$0xff]  ;;  %v155_v16 = vld [vmem:[%s3246_s3 + $0x30] sm:$0xff]  ;;  %v154_v17 = vld [vmem:[%s3246_s3 + $0x28] sm:$0xff] }
  0x13   :  { %1871 = vmatprep.subr.mxu1 %v2355_v0  ;;  %v153_v18 = vld [vmem:[%s3246_s3 + $0x20] sm:$0xff]  ;;  %v152_v19 = vld [vmem:[%s3246_s3 + $0x18] sm:$0xff]  ;;  %v151_v20 = vld [vmem:[%s3246_s3 + $0x10] sm:$0xff] }
  0x14   :  { %1872 = vmatpush3.msra.mxu1 %v56_v3  ;;  %v150_v21 = vld [vmem:[%s3246_s3 + $0x8] sm:$0xff]  ;;  %v149_v22 = vld [vmem:[%s3246_s3] sm:$0xff]  ;;  %v270_v23 = vld [vmem:[%s3248_s5 + $0x78] sm:$0xff] }
  0x15   :  { %1874 = vmatmul.mubr.msk.f32.vlgmr.msra.gmra.mxu1 %vm59_vm1, %v2436_v4  ;;  %1882 = vmatprep.subr.mxu1 %v2355_v0  ;;  %v269_v24 = vld [vmem:[%s3248_s5 + $0x70] sm:$0xff]  ;;  %v268_v25 = vld [vmem:[%s3248_s5 + $0x68] sm:$0xff]  ;;  %v267_v26 = vld [vmem:[%s3248_s5 + $0x60] sm:$0xff] }
  0x16   :  { %1876 = vmatprep.mubr.msk.f32.mxu1 %vm2356_vm0, %v2355_v0  ;;  %1883 = vmatpush3.msra.mxu1 %v164_v5  ;;  %v266_v27 = vld [vmem:[%s3248_s5 + $0x58] sm:$0xff]  ;;  %v265_v28 = vld [vmem:[%s3248_s5 + $0x50] sm:$0xff]  ;;  %v264_v29 = vld [vmem:[%s3248_s5 + $0x48] sm:$0xff] }
  0x17   :  { %1884 = vmatprep.subr.mxu1 %v2355_v0  ;;  %1924 = vmatpush3.msra.mxu0 %v270_v23  ;;  %v263_v30 = vld [vmem:[%s3248_s5 + $0x40] sm:$0xff]  ;;  %v262_v31 = vld [vmem:[%s3248_s5 + $0x38] sm:$0xff]  ;;  %v261_v32 = vld [vmem:[%s3248_s5 + $0x30] sm:$0xff] }
  0x18   :  { %1885 = vmatpush3.msra.mxu1 %v163_v6  ;;  %1925 = vmatprep.subr.mxu0 %v2355_v0  ;;  %v260_v33 = vld [vmem:[%s3248_s5 + $0x28] sm:$0xff]  ;;  %v259_v34 = vld [vmem:[%s3248_s5 + $0x20] sm:$0xff]  ;;  %v258_v35 = vld [vmem:[%s3248_s5 + $0x18] sm:$0xff] }
  0x19   :  { %1877 = vmatmul.mubr.msk.f32.gmra.mxu1 %vm59_vm1, %v2450_v7  ;;  %1886 = vmatprep.subr.mxu1 %v2355_v0  ;;  %v257_v42 = vld [vmem:[%s3248_s5 + $0x10] sm:$0xff]  ;;  %v256_v43 = vld [vmem:[%s3248_s5 + $0x8] sm:$0xff]  ;;  %v255_v44 = vld [vmem:[%s3248_s5] sm:$0xff] }
  0x1a   :  { %1879 = vmatprep.mubr.msk.f32.mxu1 %vm2356_vm0, %v2355_v0  ;;  %1887 = vmatpush3.msra.mxu1 %v162_v8  ;;  %v1538_v45 = vld [vmem:[%s3247_s4] ss:$0 sm:$0xff] }
  0x1b   :  { %1888 = vmatprep.subr.mxu1 %v2355_v0  ;;  %1926 = vmatpush3.msra.mxu0 %v269_v24  ;;  %v1539_v62 = vld [vmem:[%s3249_s6] ss:$0 sm:$0xff]  ;;  %v1547_v24 = vld [vmem:[%s3246_s3 + $0x98] sm:$0xff] }
  0x1c   :  { %1889 = vmatpush3.msra.mxu1 %v161_v9  ;;  %1927 = vmatprep.subr.mxu0 %v2355_v0  ;;  %v1548_v23 = vld [vmem:[%s3246_s3 + $0xa0] sm:$0xff] }
  0x1d   :  { %1880 = vmatmul.mubr.msk.f32.gmra.mxu1 %vm59_vm1, %v2464_v10  ;;  %1890 = vmatprep.subr.mxu1 %v2355_v0 }
  0x1e   :  { %1891 = vmatpush3.msra.mxu1 %v160_v11  ;;  %1914 = vmatprep.mubr.msk.f32.mxu1 %vm2356_vm0, %v2355_v0  ;;  %v2607_v11 = vld [vmem:[%s3245_s2] sm:$0xff] }
  0x1f   :  { %1892 = vmatprep.subr.mxu1 %v2355_v0  ;;  %1928 = vmatpush3.msra.mxu0 %v268_v25  ;;  %v1546_v25 = vld [vmem:[%s3246_s3 + $0x90] sm:$0xff] }
  0x20   :  { %1893 = vmatpush3.msra.mxu1 %v159_v12  ;;  %1929 = vmatprep.subr.mxu0 %v2355_v0  ;;  %v1559_v12 = vld [vmem:[%s3246_s3 + $0xf8] sm:$0xff] }
  0x21   :  { %1894 = vmatprep.subr.mxu1 %v2355_v0  ;;  %1930 = vmatpush3.msra.mxu0 %v267_v26  ;;  %v1545_v26 = vld [vmem:[%s3246_s3 + $0x88] sm:$0xff] }
  0x22   :  { %1895 = vmatpush3.msra.mxu1 %v158_v13  ;;  %1931 = vmatprep.subr.mxu0 %v2355_v0  ;;  %v1558_v13 = vld [vmem:[%s3246_s3 + $0xf0] sm:$0xff] }
  0x23   :  { %1896 = vmatprep.subr.mxu1 %v2355_v0  ;;  %1932 = vmatpush3.msra.mxu0 %v266_v27  ;;  %v1544_v27 = vld [vmem:[%s3246_s3 + $0x80] sm:$0xff] }
  0x24   :  { %1897 = vmatpush3.msra.mxu1 %v157_v14  ;;  %1933 = vmatprep.subr.mxu0 %v2355_v0  ;;  %v1557_v14 = vld [vmem:[%s3246_s3 + $0xe8] sm:$0xff] }
  0x25   :  { %1898 = vmatprep.subr.mxu1 %v2355_v0  ;;  %1934 = vmatpush3.msra.mxu0 %v265_v28  ;;  %v1577_v28 = vld [vmem:[%s3248_s5 + $0xf8] sm:$0xff] }
  0x26   :  { %1899 = vmatpush3.msra.mxu1 %v156_v15  ;;  %1935 = vmatprep.subr.mxu0 %v2355_v0  ;;  %v1556_v15 = vld [vmem:[%s3246_s3 + $0xe0] sm:$0xff] }
  0x27   :  { %1900 = vmatprep.subr.mxu1 %v2355_v0  ;;  %1936 = vmatpush3.msra.mxu0 %v264_v29  ;;  %v1576_v29 = vld [vmem:[%s3248_s5 + $0xf0] sm:$0xff] }
  0x28   :  { %1901 = vmatpush3.msra.mxu1 %v155_v16  ;;  %1937 = vmatprep.subr.mxu0 %v2355_v0  ;;  %v1555_v16 = vld [vmem:[%s3246_s3 + $0xd8] sm:$0xff] }
  0x29   :  { %1902 = vmatprep.subr.mxu1 %v2355_v0  ;;  %1938 = vmatpush3.msra.mxu0 %v263_v30  ;;  %v1575_v30 = vld [vmem:[%s3248_s5 + $0xe8] sm:$0xff] }
  0x2a   :  { %1903 = vmatpush3.msra.mxu1 %v154_v17  ;;  %1939 = vmatprep.subr.mxu0 %v2355_v0  ;;  %v1554_v17 = vld [vmem:[%s3246_s3 + $0xd0] sm:$0xff] }
  0x2b   :  { %1904 = vmatprep.subr.mxu1 %v2355_v0  ;;  %1940 = vmatpush3.msra.mxu0 %v262_v31  ;;  %v1574_v31 = vld [vmem:[%s3248_s5 + $0xe0] sm:$0xff] }
  0x2c   :  { %1905 = vmatpush3.msra.mxu1 %v153_v18  ;;  %1941 = vmatprep.subr.mxu0 %v2355_v0  ;;  %v1553_v18 = vld [vmem:[%s3246_s3 + $0xc8] sm:$0xff] }
  0x2d   :  { %1906 = vmatprep.subr.mxu1 %v2355_v0  ;;  %1942 = vmatpush3.msra.mxu0 %v261_v32  ;;  %v1573_v32 = vld [vmem:[%s3248_s5 + $0xd8] sm:$0xff] }
  0x2e   :  { %1907 = vmatpush3.msra.mxu1 %v152_v19  ;;  %1943 = vmatprep.subr.mxu0 %v2355_v0  ;;  %v1552_v19 = vld [vmem:[%s3246_s3 + $0xc0] sm:$0xff] }
  0x2f   :  { %1908 = vmatprep.subr.mxu1 %v2355_v0  ;;  %1944 = vmatpush3.msra.mxu0 %v260_v33  ;;  %v1572_v33 = vld [vmem:[%s3248_s5 + $0xd0] sm:$0xff] }
  0x30   :  { %1909 = vmatpush3.msra.mxu1 %v151_v20  ;;  %1945 = vmatprep.subr.mxu0 %v2355_v0  ;;  %v1551_v20 = vld [vmem:[%s3246_s3 + $0xb8] sm:$0xff] }
  0x31   :  { %1910 = vmatprep.subr.mxu1 %v2355_v0  ;;  %1946 = vmatpush3.msra.mxu0 %v259_v34  ;;  %v1571_v34 = vld [vmem:[%s3248_s5 + $0xc8] sm:$0xff] }
  0x32   :  { %1911 = vmatpush3.msra.mxu1 %v150_v21  ;;  %1947 = vmatprep.subr.mxu0 %v2355_v0  ;;  %v1550_v21 = vld [vmem:[%s3246_s3 + $0xb0] sm:$0xff] }
  0x33   :  { %1912 = vmatprep.subr.mxu1 %v2355_v0  ;;  %1948 = vmatpush3.msra.mxu0 %v258_v35  ;;  %v1570_v35 = vld [vmem:[%s3248_s5 + $0xc0] sm:$0xff] }
  0x34   :  { %1913 = vmatpush3.msra.mxu1 %v149_v22  ;;  %1949 = vmatprep.subr.mxu0 %v2355_v0  ;;  %v1549_v22 = vld [vmem:[%s3246_s3 + $0xa8] sm:$0xff] }
  0x35   :  { %1964 = vmatprep.subr.mxu1 %v2355_v0  ;;  %1950 = vmatpush3.msra.mxu0 %v257_v42 }
  0x36   :  { %1951 = vmatprep.subr.mxu0 %v2355_v0 }
  0x37   :  { %1952 = vmatpush3.msra.mxu0 %v256_v43 }
  0x38   :  { %1953 = vmatprep.subr.mxu0 %v2355_v0 }
  0x39   :  { %1954 = vmatpush3.msra.mxu0 %v255_v44 }
  0x3a   :  { %1973 = vmatprep.subr.mxu0 %v2355_v0 }
  0xd5   :  { %v135_v36 = vpop.f32.mrf.mxu1 }
  0xd6   :  { %1915 = vmatmul.mubr.f32.vlgmr.msra.gmra.mxu1 %v135_v36  ;;  %v1569_v36 = vld [vmem:[%s3248_s5 + $0xb8] sm:$0xff] }
  0xd7   :  { %v1875_v37 = vpop.f32.mrf.mxu1  ;;  %1917 = vmatprep.mubr.msk.f32.mxu1 %vm2356_vm0, %v2355_v0 }
  0xd8   :  { %v1568_v37 = vld [vmem:[%s3248_s5 + $0xb0] sm:$0xff] }
  0xd9   :  { %v140_v38 = vpop.f32.mrf.mxu1 }
  0xda   :  { %1918 = vmatmul.mubr.f32.gmra.mxu1 %v140_v38  ;;  %v1567_v38 = vld [vmem:[%s3248_s5 + $0xa8] sm:$0xff] }
  0xdb   :  { %v1878_v39 = vpop.f32.mrf.mxu1  ;;  %1920 = vmatprep.mubr.msk.f32.mxu1 %vm2356_vm0, %v2355_v0 }
  0xdc   :  { %v1566_v39 = vld [vmem:[%s3248_s5 + $0xa0] sm:$0xff] }
  0xdd   :  { %v145_v40 = vpop.f32.mrf.mxu1 }
  0xde   :  { %1921 = vmatmul.mubr.f32.gmra.mxu1 %v145_v40  ;;  %v1565_v40 = vld [vmem:[%s3248_s5 + $0x98] sm:$0xff] }
  0xdf   :  { %v1881_v41 = vpop.f32.mrf.mxu1  ;;  %1970 = vmatprep.mubr.msk.f32.mxu1 %vm2356_vm0, %v2355_v0 }
 0x196   :  { %v238_v46 = vpop.f32.mrf.mxu1 }
 0x197   :  { %v239_v47 = vadd.f32 %v1538_v45, %v238_v46 }
 0x198   :  { %v1916_v48 = vpop.f32.mrf.mxu1 }
 0x199   :  { %v252_v49 = vmax.f32 %v239_v47, 0.0 }
 0x19a   :  { %v243_v50 = vpop.f32.mrf.mxu1 }
 0x19b   :  { %v244_v51 = vadd.f32 %v1538_v45, %v243_v50  ;;  %1956 = vmatmul.mubr.f32.vlgmr.msra.gmra.mxu0 %v252_v49  ;;  %v1564_v49 = vld [vmem:[%s3248_s5 + $0x90] sm:$0xff]  ;;  %v1563_v50 = vld [vmem:[%s3248_s5 + $0x88] sm:$0xff] }
 0x19c   :  { %v1919_v52 = vpop.f32.mrf.mxu1  ;;  %1958 = vmatprep.mubr.msk.f32.mxu0 %vm2356_vm0, %v2355_v0 }
 0x19d   :  { %v253_v53 = vmax.f32 %v244_v51, 0.0  ;;  %v1562_v51 = vld [vmem:[%s3248_s5 + $0x80] sm:$0xff] }
 0x19e   :  { %v248_v54 = vpop.f32.mrf.mxu1  ;;  %v1561_v52 = vld [vmem:[%s3247_s4 + $0x1] ss:$0 sm:$0xff] }
 0x19f   :  { %v249_v55 = vadd.f32 %v1538_v45, %v248_v54  ;;  %1959 = vmatmul.mubr.f32.gmra.mxu0 %v253_v53 }
 0x1a0   :  { %v1922_v56 = vpop.f32.mrf.mxu1  ;;  %1961 = vmatprep.mubr.msk.f32.mxu0 %vm2356_vm0, %v2355_v0 }
 0x1a1   :  { %v254_v57 = vmax.f32 %v249_v55, 0.0 }
 0x1a3   :  { %1962 = vmatmul.mubr.f32.gmra.mxu0 %v254_v57 }
 0x1a4   :  { %1979 = vmatprep.mubr.msk.f32.mxu0 %vm2356_vm0, %v2355_v0 }
 0x25b   :  { %v344_v58 = vpop.f32.mrf.mxu0 }
 0x25c   :  { %v345_v5 = vadd.f32 %v1539_v62, %v344_v58 }
 0x25d   :  { %v1957_v59 = vpop.f32.mrf.mxu0 }
 0x25e   :  { %v358_v9 = vmax.f32 %v345_v5, 0.0  ;;  %v1594_v5 = vld [vmem:[%s3250_s7 + $0xe8] sm:$0xff] }
 0x25f   :  { %v349_v60 = vpop.f32.mrf.mxu0 }
 0x260   :  { %v350_v1 = vadd.f32 %v1539_v62, %v349_v60 }
 0x261   :  { %v1960_v61 = vpop.f32.mrf.mxu0 }
 0x262   :  { %v359_v8 = vmax.f32 %v350_v1, 0.0 }
 0x263   :  { %v354_v63 = vpop.f32.mrf.mxu0 }
 0x264   :  { %v355_v2 = vadd.f32 %v1539_v62, %v354_v63 }
 0x265   :  { %v1963_v3 = vpop.f32.mrf.mxu0 }
 0x266   :  { %v360_v6 = vmax.f32 %v355_v2, 0.0  ;;  %v1596_v2 = vld [vmem:[%s3250_s7 + $0xf8] sm:$0xff]  ;;  %v1595_v3 = vld [vmem:[%s3250_s7 + $0xf0] sm:$0xff] }
 0x268   :  { %1965 = vmatpush3.msra.mxu1 %v360_v6  ;;  %1974 = vmatpush3.msra.mxu0 %v360_v6  ;;  %v1593_v6 = vld [vmem:[%s3250_s7 + $0xe0] sm:$0xff] }
 0x269   :  { %1966 = vmatprep.subr.mxu1 %v2355_v0  ;;  %1975 = vmatprep.subr.mxu0 %v2355_v0 }
 0x26a   :  { %1967 = vmatpush3.msra.mxu1 %v359_v8  ;;  %1976 = vmatpush3.msra.mxu0 %v359_v8  ;;  %v1592_v8 = vld [vmem:[%s3250_s7 + $0xd8] sm:$0xff] }
 0x26b   :  { %1968 = vmatprep.subr.mxu1 %v2355_v0  ;;  %1977 = vmatprep.subr.mxu0 %v2355_v0 }
 0x26c   :  { %1969 = vmatpush3.msra.mxu1 %v358_v9  ;;  %1978 = vmatpush3.msra.mxu0 %v358_v9  ;;  %v1591_v9 = vld [vmem:[%s3250_s7 + $0xd0] sm:$0xff] }
 0x26d   :  { %1980 = vmatmul.mubr.msk.f32.vlgmr.msra.gmra.mxu0 %vm59_vm1, %v2436_v4  ;;  %1971 = vmatmul.mubr.msk.f32.vlgmr.msra.gmra.mxu1 %vm59_vm1, %v2607_v11 }
 0x26e   :  { %1982 = vmatprep.mubr.msk.f32.mxu0 %vm2356_vm0, %v2355_v0  ;;  %1988 = vmatprep.subr.mxu1 %v2355_v0 }
 0x26f   :  { %1989 = vmatpush3.msra.mxu1 %v1559_v12  ;;  %2020 = vmatprep.mubr.msk.f32.mxu1 %vm2356_vm0, %v2355_v0  ;;  %v1590_v12 = vld [vmem:[%s3250_s7 + $0xc8] sm:$0xff] }
 0x270   :  { %1990 = vmatprep.subr.mxu1 %v2355_v0  ;;  %2029 = vmatprep.subr.mxu0 %v2355_v0 }
 0x271   :  { %1983 = vmatmul.mubr.msk.f32.gmra.mxu0 %vm59_vm1, %v2450_v7  ;;  %1991 = vmatpush3.msra.mxu1 %v1558_v13  ;;  %v1589_v13 = vld [vmem:[%s3250_s7 + $0xc0] sm:$0xff] }
 0x272   :  { %1985 = vmatprep.mubr.msk.f32.mxu0 %vm2356_vm0, %v2355_v0  ;;  %1992 = vmatprep.subr.mxu1 %v2355_v0 }
 0x273   :  { %1993 = vmatpush3.msra.mxu1 %v1557_v14  ;;  %2030 = vmatpush3.msra.mxu0 %v1577_v28  ;;  %v1588_v14 = vld [vmem:[%s3250_s7 + $0xb8] sm:$0xff] }
 0x274   :  { %1994 = vmatprep.subr.mxu1 %v2355_v0  ;;  %2031 = vmatprep.subr.mxu0 %v2355_v0 }
 0x275   :  { %1986 = vmatmul.mubr.msk.f32.gmra.mxu0 %vm59_vm1, %v2464_v10  ;;  %1995 = vmatpush3.msra.mxu1 %v1556_v15  ;;  %v1587_v15 = vld [vmem:[%s3250_s7 + $0xb0] sm:$0xff] }
 0x276   :  { %1996 = vmatprep.subr.mxu1 %v2355_v0  ;;  %2061 = vmatprep.mubr.msk.f32.mxu0 %vm2356_vm0, %v2355_v0 }
 0x277   :  { %1997 = vmatpush3.msra.mxu1 %v1555_v16  ;;  %2032 = vmatpush3.msra.mxu0 %v1576_v29  ;;  %v1586_v16 = vld [vmem:[%s3250_s7 + $0xa8] sm:$0xff] }
 0x278   :  { %1998 = vmatprep.subr.mxu1 %v2355_v0  ;;  %2033 = vmatprep.subr.mxu0 %v2355_v0 }
 0x279   :  { %1999 = vmatpush3.msra.mxu1 %v1554_v17  ;;  %2034 = vmatpush3.msra.mxu0 %v1575_v30  ;;  %v1585_v17 = vld [vmem:[%s3250_s7 + $0xa0] sm:$0xff] }
 0x27a   :  { %2000 = vmatprep.subr.mxu1 %v2355_v0  ;;  %2035 = vmatprep.subr.mxu0 %v2355_v0 }
 0x27b   :  { %2001 = vmatpush3.msra.mxu1 %v1553_v18  ;;  %2036 = vmatpush3.msra.mxu0 %v1574_v31  ;;  %v1584_v18 = vld [vmem:[%s3250_s7 + $0x98] sm:$0xff] }
 0x27c   :  { %2002 = vmatprep.subr.mxu1 %v2355_v0  ;;  %2037 = vmatprep.subr.mxu0 %v2355_v0 }
 0x27d   :  { %2003 = vmatpush3.msra.mxu1 %v1552_v19  ;;  %2038 = vmatpush3.msra.mxu0 %v1573_v32  ;;  %v1583_v19 = vld [vmem:[%s3250_s7 + $0x90] sm:$0xff] }
 0x27e   :  { %2004 = vmatprep.subr.mxu1 %v2355_v0  ;;  %2039 = vmatprep.subr.mxu0 %v2355_v0 }
 0x27f   :  { %2005 = vmatpush3.msra.mxu1 %v1551_v20  ;;  %2040 = vmatpush3.msra.mxu0 %v1572_v33  ;;  %v1582_v20 = vld [vmem:[%s3250_s7 + $0x88] sm:$0xff] }
 0x280   :  { %2006 = vmatprep.subr.mxu1 %v2355_v0  ;;  %2041 = vmatprep.subr.mxu0 %v2355_v0 }
 0x281   :  { %2007 = vmatpush3.msra.mxu1 %v1550_v21  ;;  %2042 = vmatpush3.msra.mxu0 %v1571_v34  ;;  %v1581_v21 = vld [vmem:[%s3250_s7 + $0x80] sm:$0xff] }
 0x282   :  { %2008 = vmatprep.subr.mxu1 %v2355_v0  ;;  %2043 = vmatprep.subr.mxu0 %v2355_v0 }
 0x283   :  { %2009 = vmatpush3.msra.mxu1 %v1549_v22  ;;  %2044 = vmatpush3.msra.mxu0 %v1570_v35  ;;  %v449_v35 = vld [vmem:[%s3250_s7 + $0x78] sm:$0xff] }
 0x284   :  { %2010 = vmatprep.subr.mxu1 %v2355_v0  ;;  %2045 = vmatprep.subr.mxu0 %v2355_v0 }
 0x285   :  { %2011 = vmatpush3.msra.mxu1 %v1548_v23  ;;  %2046 = vmatpush3.msra.mxu0 %v1569_v36  ;;  %v448_v36 = vld [vmem:[%s3250_s7 + $0x70] sm:$0xff] }
 0x286   :  { %2012 = vmatprep.subr.mxu1 %v2355_v0  ;;  %2047 = vmatprep.subr.mxu0 %v2355_v0 }
 0x287   :  { %2013 = vmatpush3.msra.mxu1 %v1547_v24  ;;  %2048 = vmatpush3.msra.mxu0 %v1568_v37  ;;  %v447_v37 = vld [vmem:[%s3250_s7 + $0x68] sm:$0xff] }
 0x288   :  { %2014 = vmatprep.subr.mxu1 %v2355_v0  ;;  %2049 = vmatprep.subr.mxu0 %v2355_v0 }
 0x289   :  { %2015 = vmatpush3.msra.mxu1 %v1546_v25  ;;  %2050 = vmatpush3.msra.mxu0 %v1567_v38  ;;  %v446_v38 = vld [vmem:[%s3250_s7 + $0x60] sm:$0xff] }
 0x28a   :  { %2016 = vmatprep.subr.mxu1 %v2355_v0  ;;  %2051 = vmatprep.subr.mxu0 %v2355_v0 }
 0x28b   :  { %2017 = vmatpush3.msra.mxu1 %v1545_v26  ;;  %2052 = vmatpush3.msra.mxu0 %v1566_v39  ;;  %v1579_v26 = vld [vmem:[%s3249_s6 + $0x1] ss:$0 sm:$0xff]  ;;  %v445_v39 = vld [vmem:[%s3250_s7 + $0x58] sm:$0xff] }
 0x28c   :  { %2018 = vmatprep.subr.mxu1 %v2355_v0  ;;  %2053 = vmatprep.subr.mxu0 %v2355_v0 }
 0x28d   :  { %2019 = vmatpush3.msra.mxu1 %v1544_v27  ;;  %2054 = vmatpush3.msra.mxu0 %v1565_v40  ;;  %v444_v40 = vld [vmem:[%s3250_s7 + $0x50] sm:$0xff] }
 0x28e   :  { %2070 = vmatprep.subr.mxu1 %v2355_v0  ;;  %2055 = vmatprep.subr.mxu0 %v2355_v0 }
 0x28f   :  { %2056 = vmatpush3.msra.mxu0 %v1564_v49  ;;  %v436_v49 = vld [vmem:[%s3250_s7 + $0x10] sm:$0xff] }
 0x290   :  { %2057 = vmatprep.subr.mxu0 %v2355_v0 }
 0x291   :  { %2058 = vmatpush3.msra.mxu0 %v1563_v50  ;;  %v435_v50 = vld [vmem:[%s3250_s7 + $0x8] sm:$0xff] }
 0x292   :  { %2059 = vmatprep.subr.mxu0 %v2355_v0 }
 0x293   :  { %2060 = vmatpush3.msra.mxu0 %v1562_v51  ;;  %v434_v51 = vld [vmem:[%s3250_s7] sm:$0xff] }
 0x294   :  { %2079 = vmatprep.subr.mxu0 %v2355_v0 }
 0x32d   :  { %v516_v41 = vpop.f32.mrf.mxu0  ;;  %v2745_v42 = vpop.f32.mrf.mxu1 }
 0x32e   :  { %2021 = vmatmul.mubr.f32.vlgmr.msra.gmra.mxu1 %v516_v41  ;;  %v443_v41 = vld [vmem:[%s3250_s7 + $0x48] sm:$0xff] }
 0x32f   :  { %v1981_v43 = vpop.f32.mrf.mxu0  ;;  %2023 = vmatprep.mubr.msk.f32.mxu1 %vm2356_vm0, %v2355_v0  ;;  %v1972_v44 = vpop.f32.mrf.mxu1 }
 0x330   :  { %v442_v43 = vld [vmem:[%s3250_s7 + $0x40] sm:$0xff]  ;;  %v441_v44 = vld [vmem:[%s3250_s7 + $0x38] sm:$0xff] }
 0x331   :  { %v521_v45 = vpop.f32.mrf.mxu0 }
 0x332   :  { %2024 = vmatmul.mubr.f32.gmra.mxu1 %v521_v45  ;;  %v440_v45 = vld [vmem:[%s3250_s7 + $0x30] sm:$0xff] }
 0x333   :  { %v1984_v46 = vpop.f32.mrf.mxu0  ;;  %2026 = vmatprep.mubr.msk.f32.mxu1 %vm2356_vm0, %v2355_v0 }
 0x334   :  { %v439_v46 = vld [vmem:[%s3250_s7 + $0x28] sm:$0xff] }
 0x335   :  { %v526_v47 = vpop.f32.mrf.mxu0 }
 0x336   :  { %2027 = vmatmul.mubr.f32.gmra.mxu1 %v526_v47  ;;  %v438_v47 = vld [vmem:[%s3250_s7 + $0x20] sm:$0xff] }
 0x337   :  { %v1987_v48 = vpop.f32.mrf.mxu0  ;;  %2076 = vmatprep.mubr.msk.f32.mxu1 %vm2356_vm0, %v2355_v0 }
 0x338   :  { %v437_v48 = vld [vmem:[%s3250_s7 + $0x18] sm:$0xff] }
 0x3ee   :  { %v621_v53 = vpop.f32.mrf.mxu1 }
 0x3ef   :  { %v622_v54 = vadd.f32 %v1561_v52, %v621_v53 }
 0x3f0   :  { %v2022_v55 = vpop.f32.mrf.mxu1 }
 0x3f1   :  { %v635_v56 = vmax.f32 %v622_v54, 0.0  ;;  %v1614_v54 = vld [vmem:[%s3246_s3 + $0x170] sm:$0xff]  ;;  %v1613_v55 = vld [vmem:[%s3246_s3 + $0x168] sm:$0xff] }
 0x3f2   :  { %v626_v57 = vpop.f32.mrf.mxu1 }
 0x3f3   :  { %v627_v58 = vadd.f32 %v1561_v52, %v626_v57  ;;  %2062 = vmatmul.mubr.f32.vlgmr.msra.gmra.mxu0 %v635_v56  ;;  %v1611_v56 = vld [vmem:[%s3246_s3 + $0x158] sm:$0xff]  ;;  %v1609_v57 = vld [vmem:[%s3246_s3 + $0x148] sm:$0xff] }
 0x3f4   :  { %v2025_v59 = vpop.f32.mrf.mxu1  ;;  %2064 = vmatprep.mubr.msk.f32.mxu0 %vm2356_vm0, %v2355_v0  ;;  %2080 = vmatpush3.msra.mxu0 %v1596_v2  ;;  %v1602_v2 = vld [vmem:[%s3246_s3 + $0x110] sm:$0xff] }
 0x3f5   :  { %v636_v60 = vmax.f32 %v627_v58, 0.0  ;;  %2081 = vmatprep.subr.mxu0 %v2355_v0  ;;  %v1607_v58 = vld [vmem:[%s3246_s3 + $0x138] sm:$0xff]  ;;  %v1606_v59 = vld [vmem:[%s3246_s3 + $0x130] sm:$0xff] }
 0x3f6   :  { %v631_v61 = vpop.f32.mrf.mxu1  ;;  %2082 = vmatpush3.msra.mxu0 %v1595_v3  ;;  %v1601_v3 = vld [vmem:[%s3246_s3 + $0x108] sm:$0xff] }
 0x3f7   :  { %v632_v62 = vadd.f32 %v1561_v52, %v631_v61  ;;  %2065 = vmatmul.mubr.f32.gmra.mxu0 %v636_v60  ;;  %2083 = vmatprep.subr.mxu0 %v2355_v0  ;;  %v1605_v60 = vld [vmem:[%s3246_s3 + $0x128] sm:$0xff]  ;;  %v1604_v61 = vld [vmem:[%s3246_s3 + $0x120] sm:$0xff] }
 0x3f8   :  { %v2028_v63 = vpop.f32.mrf.mxu1  ;;  %2067 = vmatprep.mubr.msk.f32.mxu0 %vm2356_vm0, %v2355_v0  ;;  %2084 = vmatpush3.msra.mxu0 %v1594_v5  ;;  %v1600_v5 = vld [vmem:[%s3246_s3 + $0x100] sm:$0xff] }
 0x3f9   :  { %v637_v1 = vmax.f32 %v632_v62, 0.0  ;;  %2085 = vmatprep.subr.mxu0 %v2355_v0  ;;  %v1603_v62 = vld [vmem:[%s3246_s3 + $0x118] sm:$0xff] }
 0x3fa   :  { %2086 = vmatpush3.msra.mxu0 %v1593_v6  ;;  %v1633_v6 = vld [vmem:[%s3248_s5 + $0x178] sm:$0xff] }
 0x3fb   :  { %2068 = vmatmul.mubr.f32.gmra.mxu0 %v637_v1  ;;  %2087 = vmatprep.subr.mxu0 %v2355_v0 }
 0x3fc   :  { %2111 = vmatprep.mubr.msk.f32.mxu0 %vm2356_vm0, %v2355_v0  ;;  %2088 = vmatpush3.msra.mxu0 %v1592_v8  ;;  %v1632_v8 = vld [vmem:[%s3248_s5 + $0x170] sm:$0xff] }
 0x3fd   :  { %2089 = vmatprep.subr.mxu0 %v2355_v0 }
 0x3fe   :  { %2090 = vmatpush3.msra.mxu0 %v1591_v9  ;;  %v1631_v9 = vld [vmem:[%s3248_s5 + $0x168] sm:$0xff] }
 0x3ff   :  { %2091 = vmatprep.subr.mxu0 %v2355_v0 }
 0x400   :  { %2092 = vmatpush3.msra.mxu0 %v1590_v12  ;;  %v1630_v12 = vld [vmem:[%s3248_s5 + $0x160] sm:$0xff] }
 0x401   :  { %2093 = vmatprep.subr.mxu0 %v2355_v0 }
 0x402   :  { %2094 = vmatpush3.msra.mxu0 %v1589_v13  ;;  %v1629_v13 = vld [vmem:[%s3248_s5 + $0x158] sm:$0xff] }
 0x403   :  { %2095 = vmatprep.subr.mxu0 %v2355_v0 }
 0x404   :  { %2096 = vmatpush3.msra.mxu0 %v1588_v14  ;;  %v1628_v14 = vld [vmem:[%s3248_s5 + $0x150] sm:$0xff] }
 0x405   :  { %2097 = vmatprep.subr.mxu0 %v2355_v0 }
 0x406   :  { %2098 = vmatpush3.msra.mxu0 %v1587_v15  ;;  %v1627_v15 = vld [vmem:[%s3248_s5 + $0x148] sm:$0xff] }
 0x407   :  { %2099 = vmatprep.subr.mxu0 %v2355_v0 }
 0x408   :  { %2100 = vmatpush3.msra.mxu0 %v1586_v16  ;;  %v1626_v16 = vld [vmem:[%s3248_s5 + $0x140] sm:$0xff] }
 0x409   :  { %2101 = vmatprep.subr.mxu0 %v2355_v0 }
 0x40a   :  { %2102 = vmatpush3.msra.mxu0 %v1585_v17  ;;  %v1625_v17 = vld [vmem:[%s3248_s5 + $0x138] sm:$0xff] }
 0x40b   :  { %2103 = vmatprep.subr.mxu0 %v2355_v0 }
 0x40c   :  { %2104 = vmatpush3.msra.mxu0 %v1584_v18  ;;  %v1624_v18 = vld [vmem:[%s3248_s5 + $0x130] sm:$0xff] }
 0x40d   :  { %2105 = vmatprep.subr.mxu0 %v2355_v0 }
 0x40e   :  { %2106 = vmatpush3.msra.mxu0 %v1583_v19  ;;  %v1623_v19 = vld [vmem:[%s3248_s5 + $0x128] sm:$0xff] }
 0x40f   :  { %2107 = vmatprep.subr.mxu0 %v2355_v0 }
 0x410   :  { %2108 = vmatpush3.msra.mxu0 %v1582_v20  ;;  %v1622_v20 = vld [vmem:[%s3248_s5 + $0x120] sm:$0xff] }
 0x411   :  { %2109 = vmatprep.subr.mxu0 %v2355_v0 }
 0x412   :  { %2110 = vmatpush3.msra.mxu0 %v1581_v21  ;;  %v1621_v21 = vld [vmem:[%s3248_s5 + $0x118] sm:$0xff] }
 0x413   :  { %2149 = vmatprep.subr.mxu0 %v2355_v0 }
 0x4b3   :  { %v729_v22 = vpop.f32.mrf.mxu0 }
 0x4b4   :  { %v2845_v31 = vadd.f32 %v1579_v26, %v729_v22 }
 0x4b5   :  { %v2063_v23 = vpop.f32.mrf.mxu0 }
 0x4b6   :  { %v743_v34 = vmax.f32 %v2845_v31, 0.0  ;;  %v1619_v31 = vld [vmem:[%s3248_s5 + $0x108] sm:$0xff] }
 0x4b7   :  { %v734_v24 = vpop.f32.mrf.mxu0 }
 0x4b8   :  { %v2841_v28 = vadd.f32 %v1579_v26, %v734_v24 }
 0x4b9   :  { %v2066_v25 = vpop.f32.mrf.mxu0 }
 0x4ba   :  { %v744_v33 = vmax.f32 %v2841_v28, 0.0 }
 0x4bb   :  { %v739_v27 = vpop.f32.mrf.mxu0 }
 0x4bc   :  { %v2843_v29 = vadd.f32 %v1579_v26, %v739_v27 }
 0x4bd   :  { %v2069_v30 = vpop.f32.mrf.mxu0 }
 0x4be   :  { %v745_v32 = vmax.f32 %v2843_v29, 0.0  ;;  %v1620_v30 = vld [vmem:[%s3248_s5 + $0x110] sm:$0xff] }
 0x4c0   :  { %2071 = vmatpush3.msra.mxu1 %v745_v32 }
 0x4c1   :  { %2072 = vmatprep.subr.mxu1 %v2355_v0 }
 0x4c2   :  { %2073 = vmatpush3.msra.mxu1 %v744_v33 }
 0x4c3   :  { %2074 = vmatprep.subr.mxu1 %v2355_v0 }
 0x4c4   :  { %2075 = vmatpush3.msra.mxu1 %v743_v34 }
 0x4c5   :  { %2077 = vmatmul.mubr.msk.f32.vlgmr.msra.gmra.mxu1 %vm59_vm1, %v2607_v11  ;;  %2114 = vmatprep.subr.mxu1 %v2355_v0 }
 0x4c6   :  { %2115 = vmatpush3.msra.mxu1 %v449_v35  ;;  %2146 = vmatprep.mubr.msk.f32.mxu1 %vm2356_vm0, %v2355_v0 }
 0x4c7   :  { %2116 = vmatprep.subr.mxu1 %v2355_v0 }
 0x4c8   :  { %2117 = vmatpush3.msra.mxu1 %v448_v36 }
 0x4c9   :  { %2118 = vmatprep.subr.mxu1 %v2355_v0 }
 0x4ca   :  { %2119 = vmatpush3.msra.mxu1 %v447_v37 }
 0x4cb   :  { %2120 = vmatprep.subr.mxu1 %v2355_v0 }
 0x4cc   :  { %2121 = vmatpush3.msra.mxu1 %v446_v38 }
 0x4cd   :  { %2122 = vmatprep.subr.mxu1 %v2355_v0 }
 0x4ce   :  { %2123 = vmatpush3.msra.mxu1 %v445_v39 }
 0x4cf   :  { %2124 = vmatprep.subr.mxu1 %v2355_v0 }
 0x4d0   :  { %2125 = vmatpush3.msra.mxu1 %v444_v40 }
 0x4d1   :  { %2126 = vmatprep.subr.mxu1 %v2355_v0 }
 0x4d2   :  { %2127 = vmatpush3.msra.mxu1 %v443_v41 }
 0x4d3   :  { %2128 = vmatprep.subr.mxu1 %v2355_v0 }
 0x4d4   :  { %2129 = vmatpush3.msra.mxu1 %v442_v43 }
 0x4d5   :  { %2130 = vmatprep.subr.mxu1 %v2355_v0 }
 0x4d6   :  { %2131 = vmatpush3.msra.mxu1 %v441_v44 }
 0x4d7   :  { %2132 = vmatprep.subr.mxu1 %v2355_v0 }
 0x4d8   :  { %2133 = vmatpush3.msra.mxu1 %v440_v45 }
 0x4d9   :  { %2134 = vmatprep.subr.mxu1 %v2355_v0 }
 0x4da   :  { %2135 = vmatpush3.msra.mxu1 %v439_v46 }
 0x4db   :  { %2136 = vmatprep.subr.mxu1 %v2355_v0 }
 0x4dc   :  { %2137 = vmatpush3.msra.mxu1 %v438_v47  ;;  %v1652_v47 = vld [vmem:[%s3250_s7 + $0x178] sm:$0xff] }
 0x4dd   :  { %2138 = vmatprep.subr.mxu1 %v2355_v0 }
 0x4de   :  { %2139 = vmatpush3.msra.mxu1 %v437_v48  ;;  %v1651_v48 = vld [vmem:[%s3250_s7 + $0x170] sm:$0xff] }
 0x4df   :  { %2140 = vmatprep.subr.mxu1 %v2355_v0 }
 0x4e0   :  { %2141 = vmatpush3.msra.mxu1 %v436_v49  ;;  %v1650_v49 = vld [vmem:[%s3250_s7 + $0x168] sm:$0xff] }
 0x4e1   :  { %2142 = vmatprep.subr.mxu1 %v2355_v0 }
 0x4e2   :  { %2143 = vmatpush3.msra.mxu1 %v435_v50  ;;  %v1649_v50 = vld [vmem:[%s3250_s7 + $0x160] sm:$0xff] }
 0x4e3   :  { %2144 = vmatprep.subr.mxu1 %v2355_v0 }
 0x4e4   :  { %2145 = vmatpush3.msra.mxu1 %v434_v51  ;;  %v1648_v51 = vld [vmem:[%s3250_s7 + $0x158] sm:$0xff] }
 0x4e5   :  { %2147 = vmatmul.mubr.f32.vlgmr.msra.gmra.mxu1 %v2745_v42  ;;  %2205 = vmatprep.subr.mxu1 %v2355_v0  ;;  %v1615_v42 = vld [vmem:[%s3246_s3 + $0x178] sm:$0xff] }
 0x4e6   :  { %2237 = vmatprep.mubr.msk.f32.mxu1 %vm2356_vm0, %v2355_v0  ;;  %2206 = vmatpush3.msra.mxu1 %v1633_v6 }
 0x4e7   :  { %2207 = vmatprep.subr.mxu1 %v2355_v0 }
 0x4e8   :  { %2208 = vmatpush3.msra.mxu1 %v1632_v8 }
 0x4e9   :  { %2209 = vmatprep.subr.mxu1 %v2355_v0 }
 0x4ea   :  { %2210 = vmatpush3.msra.mxu1 %v1631_v9 }
 0x4eb   :  { %2211 = vmatprep.subr.mxu1 %v2355_v0 }
 0x4ec   :  { %2212 = vmatpush3.msra.mxu1 %v1630_v12 }
 0x4ed   :  { %2213 = vmatprep.subr.mxu1 %v2355_v0 }
 0x4ee   :  { %2214 = vmatpush3.msra.mxu1 %v1629_v13  ;;  %v1637_v13 = vld [vmem:[%s3250_s7 + $0x100] sm:$0xff] }
 0x4ef   :  { %2215 = vmatprep.subr.mxu1 %v2355_v0 }
 0x4f0   :  { %2216 = vmatpush3.msra.mxu1 %v1628_v14  ;;  %v1451_v14 = vld [vmem:[%s3252_s9 + $0x78] sm:$0xff] }
 0x4f1   :  { %2217 = vmatprep.subr.mxu1 %v2355_v0 }
 0x4f2   :  { %2218 = vmatpush3.msra.mxu1 %v1627_v15  ;;  %v1450_v15 = vld [vmem:[%s3252_s9 + $0x70] sm:$0xff] }
 0x4f3   :  { %2219 = vmatprep.subr.mxu1 %v2355_v0 }
 0x4f4   :  { %2220 = vmatpush3.msra.mxu1 %v1626_v16  ;;  %v1448_v16 = vld [vmem:[%s3252_s9 + $0x60] sm:$0xff] }
 0x4f5   :  { %2221 = vmatprep.subr.mxu1 %v2355_v0 }
 0x4f6   :  { %2222 = vmatpush3.msra.mxu1 %v1625_v17  ;;  %v1447_v17 = vld [vmem:[%s3252_s9 + $0x58] sm:$0xff] }
 0x4f7   :  { %2223 = vmatprep.subr.mxu1 %v2355_v0 }
 0x4f8   :  { %2224 = vmatpush3.msra.mxu1 %v1624_v18  ;;  %v1446_v18 = vld [vmem:[%s3252_s9 + $0x50] sm:$0xff] }
 0x4f9   :  { %2225 = vmatprep.subr.mxu1 %v2355_v0 }
 0x4fa   :  { %2226 = vmatpush3.msra.mxu1 %v1623_v19  ;;  %v1445_v19 = vld [vmem:[%s3252_s9 + $0x48] sm:$0xff] }
 0x4fb   :  { %2227 = vmatprep.subr.mxu1 %v2355_v0 }
 0x4fc   :  { %2228 = vmatpush3.msra.mxu1 %v1622_v20  ;;  %v1444_v20 = vld [vmem:[%s3252_s9 + $0x40] sm:$0xff] }
 0x4fd   :  { %2229 = vmatprep.subr.mxu1 %v2355_v0 }
 0x4fe   :  { %2230 = vmatpush3.msra.mxu1 %v1621_v21  ;;  %v1443_v21 = vld [vmem:[%s3252_s9 + $0x38] sm:$0xff] }
 0x4ff   :  { %2231 = vmatprep.subr.mxu1 %v2355_v0 }
 0x500   :  { %2232 = vmatpush3.msra.mxu1 %v1620_v30  ;;  %v1437_v30 = vld [vmem:[%s3252_s9 + $0x8] sm:$0xff] }
 0x501   :  { %2233 = vmatprep.subr.mxu1 %v2355_v0 }
 0x502   :  { %2234 = vmatpush3.msra.mxu1 %v1619_v31  ;;  %v1436_v31 = vld [vmem:[%s3252_s9] sm:$0xff] }
 0x503   :  { %2235 = vmatprep.subr.mxu1 %v2355_v0 }
 0x585   :  { %v812_v52 = vpop.f32.mrf.mxu1 }
 0x586   :  { %2112 = vmatmul.mubr.f32.vlgmr.msra.gmra.mxu0 %v812_v52  ;;  %v1647_v52 = vld [vmem:[%s3250_s7 + $0x150] sm:$0xff] }
 0x587   :  { %2150 = vmatpush3.msra.mxu0 %v745_v32  ;;  %v2078_v53 = vpop.f32.mrf.mxu1  ;;  %2155 = vmatprep.mubr.msk.f32.mxu0 %vm2356_vm0, %v2355_v0  ;;  %v1618_v32 = vld [vmem:[%s3248_s5 + $0x100] sm:$0xff] }
 0x588   :  { %2151 = vmatprep.subr.mxu0 %v2355_v0  ;;  %2236 = vmatpush3.msra.mxu1 %v1618_v32  ;;  %v1646_v53 = vld [vmem:[%s3250_s7 + $0x148] sm:$0xff] }
 0x589   :  { %2152 = vmatpush3.msra.mxu0 %v744_v33  ;;  %2255 = vmatprep.subr.mxu1 %v2355_v0  ;;  %v1617_v33 = vld [vmem:[%s3247_s4 + $0x2] ss:$0 sm:$0xff] }
 0x58a   :  { %2153 = vmatprep.subr.mxu0 %v2355_v0 }
 0x58b   :  { %2154 = vmatpush3.msra.mxu0 %v743_v34 }
 0x58c   :  { %2156 = vmatmul.mubr.msk.f32.vlgmr.msra.gmra.mxu0 %vm59_vm1, %v2436_v4  ;;  %2164 = vmatprep.subr.mxu0 %v2355_v0  ;;  %v1612_v4 = vld [vmem:[%s3246_s3 + $0x160] sm:$0xff] }
 0x58d   :  { %2158 = vmatprep.mubr.msk.f32.mxu0 %vm2356_vm0, %v2355_v0  ;;  %2165 = vmatpush3.msra.mxu0 %v1615_v42  ;;  %v1645_v42 = vld [vmem:[%s3250_s7 + $0x140] sm:$0xff] }
 0x58e   :  { %2166 = vmatprep.subr.mxu0 %v2355_v0 }
 0x58f   :  { %2167 = vmatpush3.msra.mxu0 %v1614_v54  ;;  %v1644_v54 = vld [vmem:[%s3250_s7 + $0x138] sm:$0xff] }
 0x590   :  { %2159 = vmatmul.mubr.msk.f32.gmra.mxu0 %vm59_vm1, %v2450_v7  ;;  %2168 = vmatprep.subr.mxu0 %v2355_v0  ;;  %v1610_v7 = vld [vmem:[%s3246_s3 + $0x150] sm:$0xff] }
 0x591   :  { %2161 = vmatprep.mubr.msk.f32.mxu0 %vm2356_vm0, %v2355_v0  ;;  %2169 = vmatpush3.msra.mxu0 %v1613_v55  ;;  %v1643_v55 = vld [vmem:[%s3250_s7 + $0x130] sm:$0xff] }
 0x592   :  { %2170 = vmatprep.subr.mxu0 %v2355_v0 }
 0x593   :  { %2171 = vmatpush3.msra.mxu0 %v1612_v4  ;;  %v1642_v4 = vld [vmem:[%s3250_s7 + $0x128] sm:$0xff] }
 0x594   :  { %2162 = vmatmul.mubr.msk.f32.gmra.mxu0 %vm59_vm1, %v2464_v10  ;;  %2172 = vmatprep.subr.mxu0 %v2355_v0  ;;  %v1608_v10 = vld [vmem:[%s3246_s3 + $0x140] sm:$0xff] }
 0x595   :  { %2173 = vmatpush3.msra.mxu0 %v1611_v56  ;;  %2196 = vmatprep.mubr.msk.f32.mxu0 %vm2356_vm0, %v2355_v0  ;;  %v1641_v56 = vld [vmem:[%s3250_s7 + $0x120] sm:$0xff] }
 0x596   :  { %2174 = vmatprep.subr.mxu0 %v2355_v0 }
 0x597   :  { %2175 = vmatpush3.msra.mxu0 %v1610_v7  ;;  %v1640_v7 = vld [vmem:[%s3250_s7 + $0x118] sm:$0xff] }
 0x598   :  { %2176 = vmatprep.subr.mxu0 %v2355_v0 }
 0x599   :  { %2177 = vmatpush3.msra.mxu0 %v1609_v57  ;;  %v1639_v57 = vld [vmem:[%s3250_s7 + $0x110] sm:$0xff] }
 0x59a   :  { %2178 = vmatprep.subr.mxu0 %v2355_v0 }
 0x59b   :  { %2179 = vmatpush3.msra.mxu0 %v1608_v10  ;;  %v1638_v10 = vld [vmem:[%s3250_s7 + $0x108] sm:$0xff] }
 0x59c   :  { %2180 = vmatprep.subr.mxu0 %v2355_v0 }
 0x59d   :  { %2181 = vmatpush3.msra.mxu0 %v1607_v58 }
 0x59e   :  { %2182 = vmatprep.subr.mxu0 %v2355_v0 }
 0x59f   :  { %2183 = vmatpush3.msra.mxu0 %v1606_v59 }
 0x5a0   :  { %2184 = vmatprep.subr.mxu0 %v2355_v0 }
 0x5a1   :  { %2185 = vmatpush3.msra.mxu0 %v1605_v60 }
 0x5a2   :  { %2186 = vmatprep.subr.mxu0 %v2355_v0 }
 0x5a3   :  { %2187 = vmatpush3.msra.mxu0 %v1604_v61 }
 0x5a4   :  { %2188 = vmatprep.subr.mxu0 %v2355_v0 }
 0x5a5   :  { %v3000_v63 = vpop.f32.mrf.mxu1  ;;  %2189 = vmatpush3.msra.mxu0 %v1603_v62  ;;  %v1635_v62 = vld [vmem:[%s3249_s6 + $0x2] ss:$0 sm:$0xff] }
 0x5a6   :  { %2190 = vmatprep.subr.mxu0 %v2355_v0 }
 0x5a7   :  { %v2148_v1 = vpop.f32.mrf.mxu1  ;;  %2191 = vmatpush3.msra.mxu0 %v1602_v2 }
 0x5a8   :  { %2192 = vmatprep.subr.mxu0 %v2355_v0 }
 0x5a9   :  { %2193 = vmatpush3.msra.mxu0 %v1601_v3 }
 0x5aa   :  { %2194 = vmatprep.subr.mxu0 %v2355_v0 }
 0x5ab   :  { %2195 = vmatpush3.msra.mxu0 %v1600_v5 }
 0x5ac   :  { %2246 = vmatprep.subr.mxu0 %v2355_v0 }
 0x646   :  { %v3067_v22 = vpop.f32.mrf.mxu0 }
 0x647   :  { %v970_v32 = vadd.f32 %v3000_v63, %v3067_v22 }
 0x648   :  { %v2113_v23 = vpop.f32.mrf.mxu0 }
 0x649   :  { %v1442_v23 = vld [vmem:[%s3252_s9 + $0x30] sm:$0xff] }
 0x64c   :  { %v1039_v24 = vpop.f32.mrf.mxu0 }
 0x64d   :  { %2197 = vmatmul.mubr.f32.vlgmr.msra.gmra.mxu0 %v1039_v24  ;;  %v1441_v24 = vld [vmem:[%s3252_s9 + $0x28] sm:$0xff] }
 0x64e   :  { %v2157_v25 = vpop.f32.mrf.mxu0  ;;  %2199 = vmatprep.mubr.msk.f32.mxu0 %vm2356_vm0, %v2355_v0 }
 0x64f   :  { %v1440_v25 = vld [vmem:[%s3252_s9 + $0x20] sm:$0xff] }
 0x650   :  { %v1044_v26 = vpop.f32.mrf.mxu0 }
 0x651   :  { %2200 = vmatmul.mubr.f32.gmra.mxu0 %v1044_v26 }
 0x652   :  { %v2160_v27 = vpop.f32.mrf.mxu0  ;;  %2202 = vmatprep.mubr.msk.f32.mxu0 %vm2356_vm0, %v2355_v0 }
 0x654   :  { %v1049_v28 = vpop.f32.mrf.mxu0 }
 0x655   :  { %2203 = vmatmul.mubr.f32.gmra.mxu0 %v1049_v28  ;;  %v1439_v28 = vld [vmem:[%s3252_s9 + $0x18] sm:$0xff] }
 0x656   :  { %v2163_v29 = vpop.f32.mrf.mxu0  ;;  %2252 = vmatprep.mubr.msk.f32.mxu0 %vm2356_vm0, %v2355_v0 }
 0x657   :  { %v1438_v29 = vld [vmem:[%s3252_s9 + $0x10] sm:$0xff] }
 0x70d   :  { %v1144_v34 = vpop.f32.mrf.mxu0 }
 0x70e   :  { %v1145_v35 = vadd.f32 %v1617_v33, %v1144_v34  ;;  %v1653_v34 = vld [vmem:[%s3251_s8] ss:$0 sm:$0xff] }
 0x70f   :  { %v2198_v36 = vpop.f32.mrf.mxu0 }
 0x710   :  { %v1158_v37 = vmax.f32 %v1145_v35, 0.0 }
 0x711   :  { %v1149_v38 = vpop.f32.mrf.mxu0 }
 0x712   :  { %v1150_v39 = vadd.f32 %v1617_v33, %v1149_v38  ;;  %2238 = vmatmul.mubr.f32.vlgmr.msra.gmra.mxu1 %v1158_v37 }
 0x713   :  { %v2201_v40 = vpop.f32.mrf.mxu0  ;;  %2240 = vmatprep.mubr.msk.f32.mxu1 %vm2356_vm0, %v2355_v0  ;;  %2256 = vmatpush3.msra.mxu1 %v1652_v47 }
 0x714   :  { %v1159_v41 = vmax.f32 %v1150_v39, 0.0  ;;  %2257 = vmatprep.subr.mxu1 %v2355_v0 }
 0x715   :  { %v1154_v43 = vpop.f32.mrf.mxu0  ;;  %2258 = vmatpush3.msra.mxu1 %v1651_v48 }
 0x716   :  { %v1155_v44 = vadd.f32 %v1617_v33, %v1154_v43  ;;  %2241 = vmatmul.mubr.f32.gmra.mxu1 %v1159_v41  ;;  %2259 = vmatprep.subr.mxu1 %v2355_v0 }
 0x717   :  { %v2204_v45 = vpop.f32.mrf.mxu0  ;;  %2243 = vmatprep.mubr.msk.f32.mxu1 %vm2356_vm0, %v2355_v0  ;;  %2260 = vmatpush3.msra.mxu1 %v1650_v49 }
 0x718   :  { %v1160_v46 = vmax.f32 %v1155_v44, 0.0  ;;  %2261 = vmatprep.subr.mxu1 %v2355_v0 }
 0x719   :  { %2262 = vmatpush3.msra.mxu1 %v1649_v50 }
 0x71a   :  { %2244 = vmatmul.mubr.f32.gmra.mxu1 %v1160_v46  ;;  %2263 = vmatprep.subr.mxu1 %v2355_v0 }
 0x71b   :  { %2287 = vmatprep.mubr.msk.f32.mxu1 %vm2356_vm0, %v2355_v0  ;;  %2264 = vmatpush3.msra.mxu1 %v1648_v51 }
 0x71c   :  { %2265 = vmatprep.subr.mxu1 %v2355_v0 }
 0x71d   :  { %2266 = vmatpush3.msra.mxu1 %v1647_v52 }
 0x71e   :  { %2267 = vmatprep.subr.mxu1 %v2355_v0 }
 0x71f   :  { %2268 = vmatpush3.msra.mxu1 %v1646_v53 }
 0x720   :  { %2269 = vmatprep.subr.mxu1 %v2355_v0 }
 0x721   :  { %2270 = vmatpush3.msra.mxu1 %v1645_v42 }
 0x722   :  { %2271 = vmatprep.subr.mxu1 %v2355_v0 }
 0x723   :  { %2272 = vmatpush3.msra.mxu1 %v1644_v54 }
 0x724   :  { %2273 = vmatprep.subr.mxu1 %v2355_v0 }
 0x725   :  { %2274 = vmatpush3.msra.mxu1 %v1643_v55 }
 0x726   :  { %2275 = vmatprep.subr.mxu1 %v2355_v0 }
 0x727   :  { %2276 = vmatpush3.msra.mxu1 %v1642_v4 }
 0x728   :  { %2277 = vmatprep.subr.mxu1 %v2355_v0 }
 0x729   :  { %2278 = vmatpush3.msra.mxu1 %v1641_v56 }
 0x72a   :  { %2279 = vmatprep.subr.mxu1 %v2355_v0 }
 0x72b   :  { %2280 = vmatpush3.msra.mxu1 %v1640_v7 }
 0x72c   :  { %2281 = vmatprep.subr.mxu1 %v2355_v0 }
 0x72d   :  { %2282 = vmatpush3.msra.mxu1 %v1639_v57 }
 0x72e   :  { %2283 = vmatprep.subr.mxu1 %v2355_v0 }
 0x72f   :  { %2284 = vmatpush3.msra.mxu1 %v1638_v10 }
 0x730   :  { %2285 = vmatprep.subr.mxu1 %v2355_v0 }
 0x731   :  { %2286 = vmatpush3.msra.mxu1 %v1637_v13 }
 0x7d2   :  { %v1252_v58 = vpop.f32.mrf.mxu1 }
 0x7d3   :  { %v1253_v6 = vadd.f32 %v1635_v62, %v1252_v58 }
 0x7d4   :  { %v2239_v59 = vpop.f32.mrf.mxu1 }
 0x7d5   :  { %v1266_v12 = vmax.f32 %v1253_v6, 0.0 }
 0x7d6   :  { %v1257_v60 = vpop.f32.mrf.mxu1 }
 0x7d7   :  { %v1258_v2 = vadd.f32 %v1635_v62, %v1257_v60 }
 0x7d8   :  { %v2242_v61 = vpop.f32.mrf.mxu1 }
 0x7d9   :  { %v1267_v9 = vmax.f32 %v1258_v2, 0.0 }
 0x7da   :  { %v1262_v1 = vpop.f32.mrf.mxu1 }
 0x7db   :  { %v1263_v3 = vadd.f32 %v1635_v62, %v1262_v1 }
 0x7dc   :  { %v2245_v5 = vpop.f32.mrf.mxu1 }
 0x7dd   :  { %v1268_v8 = vmax.f32 %v1263_v3, 0.0 }
 0x7df   :  { %2247 = vmatpush3.msra.mxu0 %v1268_v8 }
 0x7e0   :  { %2248 = vmatprep.subr.mxu0 %v2355_v0 }
 0x7e1   :  { %2249 = vmatpush3.msra.mxu0 %v1267_v9 }
 0x7e2   :  { %2250 = vmatprep.subr.mxu0 %v2355_v0 }
 0x7e3   :  { %2251 = vmatpush3.msra.mxu0 %v1266_v12 }
 0x7e4   :  { %2253 = vmatmul.mubr.msk.f32.vlgmr.msra.gmra.mxu0 %vm59_vm1, %v2607_v11  ;;  %2290 = vmatprep.subr.mxu0 %v2355_v0  ;;  %v1449_v11 = vld [vmem:[%s3252_s9 + $0x68] sm:$0xff] }
 0x7e5   :  { %2322 = vmatprep.mubr.msk.f32.mxu0 %vm2356_vm0, %v2355_v0  ;;  %2291 = vmatpush3.msra.mxu0 %v1451_v14 }
 0x7e6   :  { %2292 = vmatprep.subr.mxu0 %v2355_v0 }
 0x7e7   :  { %2293 = vmatpush3.msra.mxu0 %v1450_v15 }
 0x7e8   :  { %2294 = vmatprep.subr.mxu0 %v2355_v0 }
 0x7e9   :  { %2295 = vmatpush3.msra.mxu0 %v1449_v11 }
 0x7ea   :  { %2296 = vmatprep.subr.mxu0 %v2355_v0 }
 0x7eb   :  { %2297 = vmatpush3.msra.mxu0 %v1448_v16 }
 0x7ec   :  { %2298 = vmatprep.subr.mxu0 %v2355_v0 }
 0x7ed   :  { %2299 = vmatpush3.msra.mxu0 %v1447_v17 }
 0x7ee   :  { %2300 = vmatprep.subr.mxu0 %v2355_v0 }
 0x7ef   :  { %2301 = vmatpush3.msra.mxu0 %v1446_v18 }
 0x7f0   :  { %2302 = vmatprep.subr.mxu0 %v2355_v0 }
 0x7f1   :  { %2303 = vmatpush3.msra.mxu0 %v1445_v19 }
 0x7f2   :  { %2304 = vmatprep.subr.mxu0 %v2355_v0 }
 0x7f3   :  { %2305 = vmatpush3.msra.mxu0 %v1444_v20 }
 0x7f4   :  { %2306 = vmatprep.subr.mxu0 %v2355_v0 }
 0x7f5   :  { %2307 = vmatpush3.msra.mxu0 %v1443_v21 }
 0x7f6   :  { %2308 = vmatprep.subr.mxu0 %v2355_v0 }
 0x7f7   :  { %2309 = vmatpush3.msra.mxu0 %v1442_v23 }
 0x7f8   :  { %2310 = vmatprep.subr.mxu0 %v2355_v0 }
 0x7f9   :  { %2311 = vmatpush3.msra.mxu0 %v1441_v24 }
 0x7fa   :  { %2312 = vmatprep.subr.mxu0 %v2355_v0 }
 0x7fb   :  { %2313 = vmatpush3.msra.mxu0 %v1440_v25 }
 0x7fc   :  { %2314 = vmatprep.subr.mxu0 %v2355_v0 }
 0x7fd   :  { %2315 = vmatpush3.msra.mxu0 %v1439_v28 }
 0x7fe   :  { %2316 = vmatprep.subr.mxu0 %v2355_v0 }
 0x7ff   :  { %2317 = vmatpush3.msra.mxu0 %v1438_v29 }
 0x800   :  { %2318 = vmatprep.subr.mxu0 %v2355_v0 }
 0x801   :  { %2319 = vmatpush3.msra.mxu0 %v1437_v30 }
 0x802   :  { %2320 = vmatprep.subr.mxu0 %v2355_v0  ;;  %v1654_v0 = vld [vmem:[%s3253_s10] ss:$0 sm:$0xff] }
 0x803   :  { %2321 = vmatpush3.msra.mxu0 %v1436_v31 }
 0x8a4   :  { %v1335_v26 = vpop.f32.mrf.mxu0 }
 0x8a5   :  { %2288 = vmatmul.mubr.f32.vlgmr.msra.gmra.mxu1 %v1335_v26 }
 0x8a6   :  { %v2254_v27 = vpop.f32.mrf.mxu0 }
 0x965   :  { %v1422_v33 = vpop.f32.mrf.mxu1 }
 0x966   :  { %v1426_v35 = vadd.f32 %v1422_v33, %v970_v32 }
 0x967   :  { %v2289_v36 = vpop.f32.mrf.mxu1 }
 0x968   :  { %v1434_v37 = vadd.f32 %v1653_v34, %v1426_v35 }
 0x96a   :  { %v1435_v38 = vmax.f32 %v1434_v37, 0.0 }
 0x96c   :  { %2323 = vmatmul.mubr.f32.vlgmr.msra.gmra.mxu0 %v1435_v38 }
 0xa2c   :  { %v1525_v39 = vpop.f32.mrf.mxu0 }
 0xa2d   :  { %v1526_v40 = vadd.f32 %v1654_v0, %v1525_v39 }
 0xa2e   :  { %v2324_v41 = vpop.f32.mrf.mxu0 }
 0xa2f   :  { %1529 = vst [vmem:[%s3254_s11] sm:$0xff] %v1526_v40 }
 0xa30   :  { %1534 = vsyncpa [#allocation3], 1 }

</bundles_post_ra>
